<compile_context>
chip_gen: v7x
topology: tpu7x:2x2x1
jax: 0.10.0
libtpu: 0.0.40
codegen_flags: <defaults>
</compile_context>

<pallas_src>
import functools

import jax
import jax.numpy as jnp
from jax.experimental import pallas as pl
from jax.experimental.pallas import tpu as pltpu


def _round_up(x, m):
    return ((x + m - 1) // m) * m


def _vmem_limit_bytes():
    """Generation-aware scoped-VMEM limit (explicitly passed to the compiler)."""
    try:
        cap = int(pltpu.get_tpu_info().vmem_capacity_bytes)
    except Exception:  # not on TPU / info unavailable -> assume smallest (v7x per-TC)
        cap = 64 * 1024 * 1024
    # Leave headroom for compiler-internal scratch; cap at ~100 MiB on big-VMEM chips.
    return min((cap * 3) // 4, 100 * 1024 * 1024)


def _pick_tile(n, align, cap):
    """Largest tile (multiple of `align`, <= cap) whose padded size is within ~6% of
    the minimal (alignment-only) padding of n.  Returns (tile, padded_n)."""
    min_pad = _round_up(n, align)
    allow = max(min_pad, (min_pad * 17) // 16)
    best_t, best_p = align, _round_up(n, align)
    for t in range(align, min(cap, min_pad) + 1, align):
        padded = _round_up(n, t)
        if padded <= allow:
            best_t, best_p = t, padded  # ascending loop -> ends at largest valid tile
    return best_t, best_p


def _interaction_kernel(q_ref, c_ref, o_ref, *, precision):
    # q_ref: (Bb, tq, D), c_ref: (Bb, tc, D), o_ref: (Bb, tq, tc)
    # Batched MXU contraction over the feature dim of both operands (A @ B^T form,
    # same layout flash attention uses for q@k^T). f32 accumulate, cast on store.
    out = jax.lax.dot_general(
        q_ref[...],
        c_ref[...],
        dimension_numbers=(((2,), (2,)), ((0,), (0,))),
        preferred_element_type=jnp.float32,
        precision=precision,
    )
    o_ref[...] = out.astype(o_ref.dtype)


def interaction_layer(
    query_features,
    corpus_features,
    batch_size,
    *,
    out_dtype=None,
    precision=jax.lax.Precision.HIGHEST,
):
    """Pallas equivalent of InteractionLayer.forward.

    query_features : [batch_size * Nq, D] or [batch_size, Nq, D]
    corpus_features: [batch_size * Nc, D] or [batch_size, Nc, D]
    returns        : [batch_size, Nq, Nc]  (out[b] = query[b] @ corpus[b]^T)
    """
    if query_features.ndim == 2:
        D = query_features.shape[-1]
        assert query_features.shape[0] % batch_size == 0
        assert corpus_features.shape[0] % batch_size == 0
        query_features = query_features.reshape(batch_size, -1, D)
        corpus_features = corpus_features.reshape(batch_size, -1, D)

    B, Nq, D = query_features.shape
    Bc, Nc, Dc = corpus_features.shape
    assert B == batch_size and Bc == batch_size and Dc == D

    if out_dtype is None:
        out_dtype = query_features.dtype  # bf16 in -> bf16 out (halves output bytes)
    in_item = jnp.dtype(query_features.dtype).itemsize
    out_item = jnp.dtype(out_dtype).itemsize

    vmem_limit = _vmem_limit_bytes()
    budget = vmem_limit // 2  # working-set budget (double-buffered blocks) w/ headroom

    # --- Balanced tile selection (multiples of 8 / 128, minimal padding) -----------
    tq, Nq_pad = _pick_tile(Nq, 8, 512)
    tc, Nc_pad = _pick_tile(Nc, 128, 512)

    def per_step_bytes(bb, tq_, tc_):
        # Double-buffered VMEM footprint of one grid step (lane dim padded to 128,
        # sublane dim to 8, per TPU tiled layout).
        q_tile = bb * _round_up(tq_, 8) * _round_up(D, 128) * in_item
        c_tile = bb * _round_up(tc_, 8) * _round_up(D, 128) * in_item
        o_tile = bb * _round_up(tq_, 8) * _round_up(tc_, 128) * out_item
        return 2 * (q_tile + c_tile + o_tile)

    while per_step_bytes(1, tq, tc) > budget and (tq > 8 or tc > 128):
        if tq >= tc and tq > 8:
            tq = max(8, _round_up(tq // 2, 8))
        elif tc > 128:
            tc = max(128, _round_up(tc // 2, 128))
        else:
            break
    Nq_pad = _round_up(Nq, tq)
    Nc_pad = _round_up(Nc, tc)
    grid_q = Nq_pad // tq
    grid_c = Nc_pad // tc

    # --- Batch fusion: only for tiny per-batch problems; keep >= 2 grid steps ------
    Bb = 1
    if grid_q * grid_c == 1 and B > 1:
        for cand in range(2, min(B, 8) + 1):
            if B % cand == 0 and B // cand >= 2 and per_step_bytes(cand, tq, tc) <= budget:
                Bb = cand
    gB = B // Bb

    # --- Minimal padding (fast path: none). Padded rows/cols are zero, dropped at
    # the end; contraction over D is always fully in-bounds. ------------------------
    qp = query_features
    cp = corpus_features
    if Nq_pad != Nq:
        qp = jnp.pad(qp, ((0, 0), (0, Nq_pad - Nq), (0, 0)))
    if Nc_pad != Nc:
        cp = jnp.pad(cp, ((0, 0), (0, Nc_pad - Nc), (0, 0)))

    # --- Grid axis order: re-stream the smaller operand across the inner loop ------
    q_is_inner = Nq_pad <= Nc_pad
    if q_is_inner:
        grid = (gB, grid_c, grid_q)
        q_spec = pl.BlockSpec((Bb, tq, D), lambda b, jc, iq: (b, iq, 0))
        c_spec = pl.BlockSpec((Bb, tc, D), lambda b, jc, iq: (b, jc, 0))
        o_spec = pl.BlockSpec((Bb, tq, tc), lambda b, jc, iq: (b, iq, jc))
        q_stream, c_stream = grid_c, 1
    else:
        grid = (gB, grid_q, grid_c)
        q_spec = pl.BlockSpec((Bb, tq, D), lambda b, iq, jc: (b, iq, 0))
        c_spec = pl.BlockSpec((Bb, tc, D), lambda b, iq, jc: (b, jc, 0))
        o_spec = pl.BlockSpec((Bb, tq, tc), lambda b, iq, jc: (b, iq, jc))
        q_stream, c_stream = 1, grid_q

    cost = pl.CostEstimate(
        flops=2 * B * Nq_pad * Nc_pad * D,
        transcendentals=0,
        bytes_accessed=int(
            B * Nq_pad * D * in_item * q_stream
            + B * Nc_pad * D * in_item * c_stream
            + B * Nq_pad * Nc_pad * out_item
        ),
    )

    out = pl.pallas_call(
        functools.partial(_interaction_kernel, precision=precision),
        out_shape=jax.ShapeDtypeStruct((B, Nq_pad, Nc_pad), out_dtype),
        grid_spec=pltpu.PrefetchScalarGridSpec(
            num_scalar_prefetch=0,
            grid=grid,
            in_specs=[q_spec, c_spec],
            out_specs=o_spec,
        ),
        compiler_params=pltpu.CompilerParams(
            dimension_semantics=("parallel", "parallel", "parallel"),
            vmem_limit_bytes=int(vmem_limit),
        ),
        cost_estimate=cost,
    )(qp, cp)

    if Nq_pad != Nq or Nc_pad != Nc:
        out = out[:, :Nq, :Nc]
    return out


def _reference(query_features, corpus_features, batch_size):
    D = query_features.shape[-1]
    q = query_features.reshape(batch_size, -1, D).astype(jnp.float32)
    c = corpus_features.reshape(batch_size, -1, D).astype(jnp.float32)
    return jnp.einsum("bqd,bkd->bqk", q, c, precision=jax.lax.Precision.HIGHEST)


if __name__ == "__main__":
    key = jax.random.PRNGKey(0)
    kq, kc, kq2, kc2, kq3, kc3 = jax.random.split(key, 6)

    # Case 1: small, flat (node, feature) inputs as the module interface implies.
    B, Nq, Nc, D = 2, 8, 8, 32
    query = jax.random.normal(kq, (B * Nq, D), dtype=jnp.float32)
    corpus = jax.random.normal(kc, (B * Nc, D), dtype=jnp.float32)
    out = jax.block_until_ready(interaction_layer(query, corpus, B))
    ref = _reference(query, corpus, B)
    assert out.shape == (B, Nq, Nc)
    assert jnp.allclose(out, ref, atol=1e-4, rtol=1e-4), "mismatch vs reference (case 1)"

    # Case 2: unaligned node counts (exercises the minimal-padding path + slice).
    B2, Nq2, Nc2, D2 = 4, 24, 40, 64
    query2 = jax.random.normal(kq2, (B2, Nq2, D2), dtype=jnp.float32)
    corpus2 = jax.random.normal(kc2, (B2, Nc2, D2), dtype=jnp.float32)
    out2 = jax.block_until_ready(interaction_layer(query2, corpus2, B2))
    ref2 = jnp.einsum("bqd,bkd->bqk", query2, corpus2, precision=jax.lax.Precision.HIGHEST)
    assert out2.shape == (B2, Nq2, Nc2)
    assert jnp.allclose(out2, ref2, atol=1e-4, rtol=1e-4), "mismatch vs reference (case 2)"

    # Case 3: aligned shapes (fast path: no pad, no slice, multi-tile grid).
    B3, Nq3, Nc3, D3 = 2, 128, 256, 64
    query3 = jax.random.normal(kq3, (B3, Nq3, D3), dtype=jnp.float32)
    corpus3 = jax.random.normal(kc3, (B3, Nc3, D3), dtype=jnp.float32)
    out3 = jax.block_until_ready(interaction_layer(query3, corpus3, B3))
    ref3 = jnp.einsum("bqd,bkd->bqk", query3, corpus3, precision=jax.lax.Precision.HIGHEST)
    assert out3.shape == (B3, Nq3, Nc3)
    assert jnp.allclose(out3, ref3, atol=1e-3, rtol=1e-3), "mismatch vs reference (case 3)"

    print("KERNEL_OK")
</pallas_src>

<mosaic_0001>
module attributes {stable_mosaic.version = 11 : i64} {
  func.func @_interaction_kernel(%arg0: i32, %arg1: i32, %arg2: i32, %arg3: memref<1x8x32xf32, #tpu.memory_space<vmem>>, %arg4: memref<1x128x32xf32, #tpu.memory_space<vmem>>, %arg5: memref<1x8x128xf32, #tpu.memory_space<vmem>>) attributes {dimension_semantics = [#tpu.dimension_semantics<parallel>, #tpu.dimension_semantics<parallel>, #tpu.dimension_semantics<parallel>], iteration_bounds = array<i64: 2, 1, 1>, scalar_prefetch = 0 : i64, scratch_operands = 0 : i64, tpu.core_type = #tpu.core_type<tc>, window_params = [{transform_indices = @transform_0, window_bounds = array<i64: 1, 8, 32>}, {transform_indices = @transform_1, window_bounds = array<i64: 1, 128, 32>}, {transform_indices = @transform_2, window_bounds = array<i64: 1, 8, 128>}]} {
    %c0 = arith.constant 0 : index
    %c0_0 = arith.constant 0 : index
    %c0_1 = arith.constant 0 : index
    %0 = vector.load %arg3[%c0, %c0_0, %c0_1] : memref<1x8x32xf32, #tpu.memory_space<vmem>>, vector<1x8x32xf32>
    %c0_2 = arith.constant 0 : index
    %c0_3 = arith.constant 0 : index
    %c0_4 = arith.constant 0 : index
    %1 = vector.load %arg4[%c0_2, %c0_3, %c0_4] : memref<1x128x32xf32, #tpu.memory_space<vmem>>, vector<1x128x32xf32>
    %cst = arith.constant dense<0.000000e+00> : vector<1x8x128xf32>
    %2 = tpu.matmul %0, %1, %cst {dimension_numbers = #tpu.dot_dimension_numbers<[2], [2], [1], [1], [0, 0, 0, 1, 1, 1], [0], [0]>, precision = #tpu.contract_precision<fp32>} : vector<1x8x32xf32>, vector<1x128x32xf32>, vector<1x8x128xf32> -> vector<1x8x128xf32>
    %c0_5 = arith.constant 0 : index
    %c0_6 = arith.constant 0 : index
    %c0_7 = arith.constant 0 : index
    %3 = vector.load %arg5[%c0_5, %c0_6, %c0_7] : memref<1x8x128xf32, #tpu.memory_space<vmem>>, vector<1x8x128xf32>
    tpu.vector_store %arg5[%c0_5, %c0_6, %c0_7], %2 {strides = array<i32>} : memref<1x8x128xf32, #tpu.memory_space<vmem>>, vector<1x8x128xf32>,
    return
  }
  func.func @transform_0(%arg0: i32, %arg1: i32, %arg2: i32) -> (i32, i32, i32) {
    %c0_i32 = arith.constant 0 : i32
    %c0_i32_0 = arith.constant 0 : i32
    return %arg0, %arg2, %c0_i32 : i32, i32, i32
  }
  func.func @transform_1(%arg0: i32, %arg1: i32, %arg2: i32) -> (i32, i32, i32) {
    %c0_i32 = arith.constant 0 : i32
    %c0_i32_0 = arith.constant 0 : i32
    return %arg0, %arg1, %c0_i32 : i32, i32, i32
  }
  func.func @transform_2(%arg0: i32, %arg1: i32, %arg2: i32) -> (i32, i32, i32) {
    %c0_i32 = arith.constant 0 : i32
    return %arg0, %arg2, %arg1 : i32, i32, i32
  }
}

</mosaic_0001>

<bundles_post_ra>
// kernel: tpu_custom_call.1
= control target key start
LH: loop header
LB: loop body
LE: loop exit
PB: predicated region body
PF: predicated region fallthrough
CT: control target
= control target key end

     0   :  { %7 = vsyncpa [#allocation3], 0  ;;  %s2034_s0 = inlined_call_operand.vmem [shape: f32[2,8,32], index: 0, kind: input, shape index: {}]   ;;  %s2035_s1 = inlined_call_operand.vmem [shape: f32[2,128,32], index: 1, kind: input, shape index: {}]   ;;  %s2036_s2 = inlined_call_operand.hbm [shape: f32[2,8,128], index: 2, kind: output, shape index: {}]  }
   0x1   :  { %9 = vsyncpa [#allocation3 + $0x1], 0  ;;  %s1665_s9 = smov 0   ;;  %s1667_s10 = smov 0  }
   0x2   :  { %s1669_s11 = smov 0   ;;  %s1671_s12 = smov 0  }
   0x3   :  { %s1673_s13 = smov 0   ;;  %s1675_s14 = smov 0  }
   0x4 LB: > { %s1029_s15 = sadd.s32 4294967295, %s1644_s14   ;;  %s1030_s16 = sadd.s32 4294967294, %s1644_s14   ;;  %s1644_s14 = sphi %s1675_s14, %s15_s14   ;;  %s1640_s13 = sphi %s1673_s13, %s2043_s13   ;;  %s1636_s12 = sphi %s1671_s12, %s2042_s12   ;;  %s1632_s11 = sphi %s1669_s11, %s2041_s11   ;;  %s1628_s10 = sphi %s1667_s10, %s2040_s10   ;;  %s1624_s9 = sphi %s1665_s9, %s2039_s9  }
   0x5   : > { %s34_s17 = sadd.s32 1, %s1640_s13  ;;  %s101_s18 = sadd.s32 1, %s1632_s11 }
   0x6   : > { %p36_p0 = scmp.ge.s32.totalorder %s34_s17, 2  ;;  %p111_p1 = scmp.ne.s32.totalorder %s1632_s11, %s1628_s10 }
   0x7   : > { %p112_p2 = scmp.eq.s32.totalorder %s1029_s15, 1  ;;  %p117_p3 = scmp.ne.s32.totalorder %s1628_s10, %s1624_s9 }
   0x8   : > { %s2045_s17 = smov (%p36_p0, %s34_s17), 0  ;;  %p118_p5 = scmp.eq.s32.totalorder %s1030_s16, 1 }
   0x9   : > { %p1705_p4 = por %p112_p2, %p111_p1  ;;  %s94_s20 = ssub.s32 %s1640_s13, %s2045_s17 }
   0xa   : > { %p1033_p6 = scmp.ge.s32.totalorder %s1644_s14, 1  ;;  %p99_p7 = scmp.eq.s32.totalorder %s94_s20, 0 }
   0xb   : > { %p1712_p8 = por %p118_p5, %p117_p3  ;;  %p159_p9 = scmp.lt.s32.totalorder %s1644_s14, 3 }
   0xc   : > { %s1718_s22 = scalar_select %p99_p7, %s1632_s11, %s101_s18  }
   0xd   : > { %p160_p10 = pnand %p1033_p6, %p159_p9 }
   0xe   : > { %p192_p11 = scmp.lt.s32.totalorder (!%p160_p10), %s1636_s12, 1  ;;  %v1646_v0 = vmov (!%p160_p10), 0.0|0.0   ;;  %vm1647_vm0 = vmmov (!%p160_p10), 0   ;;  %v1648_v1 = vmov (!%p160_p10), 0.0   ;;  %vm226_vm1 = vcmask (!%p160_p10), 261120   ;;  %s189_s4 = sand.u32 (!%p160_p10), 1, %s1628_s10  }
   0xf   : > { %163 = sbr.rel (%p160_p10) target bundleno = 451 (0x1c3), region = 28  ;;  %1355 = vmatprep.subr.bf16.mxu1 (!%p160_p10), %v1646_v0  ;;  %1427 = vmatprep.subr.bf16.mxu0 (!%p160_p10), %v1646_v0  ;;  %s1034_s5 = sshll.u32 (!%p160_p10), %s189_s4, 3 }
  0x10   : > { %1177 = vmatprep.mubr.msk.f32.mxu1 (!%p160_p10), %vm1647_vm0, %v1648_v1  ;;  %1282 = vmatprep.mubr.msk.f32.mxu0 (!%p160_p10), %vm1647_vm0, %v1648_v1  ;;  %s1039_s6 = sshll.u32 (!%p160_p10), %s1636_s12, 7  ;;  %s191_s7 = scalar_lea.vmem (!%p160_p10), [#allocation2], %s1034_s5 }
  0x11   : > { %s936_s8 = sshll.u32 (!%p160_p10), %s191_s7, 4  ;;  %s1987_s18 = scalar_lea.hbm (!%p160_p10), %s2036_s2, %s1039_s6  ;;  %s1989_s8 = int_to_ptr.vmem [resolvable:$true] %s936_s8 }
  0x12   : > { %s921_s20 = scalar_lea.sflag (!%p160_p10), [#allocation3], %s189_s4 }
  0x16   : > { %s1724_s23 = scalar_select %p192_p11, %s1636_s12, 1 }
  0x17   : > { %s1566_s12 = scalar_lea.vmem %s1989_s8, 128 }
  0x18   : > { %s1042_s24 = sshll.u32 %s1724_s23, 7  ;;  %s1035_s28 = sshll.u32 %s1724_s23, 3 }
  0x19   : > { %s1734_s27 = scalar_lea.vmem %s2035_s1, %s1042_s24  ;;  %s198_s3 = scalar_lea.vmem %s2034_s0, %s1035_s28 }
  0x1a   : > { %v210_v2 = vld [vmem:[%s1734_s27] sm:$0xff]  ;;  %v211_v3 = vld [vmem:[%s1734_s27 + $0x8] sm:$0xff]  ;;  %v212_v4 = vld [vmem:[%s1734_s27 + $0x10] sm:$0xff]  ;;  %p1567_p12 = scmp.ne.s32.totalorder %s1989_s8, %s1566_s12  ;;  %s1649_s23 = smov [#allocation2]  }
  0x1b   : > { %v231_v5 = vsel %vm226_vm1, %v210_v2, 0  ;;  %v234_v6 = vsel %vm226_vm1, %v211_v3, 0  ;;  %v213_v7 = vld [vmem:[%s1734_s27 + $0x18] sm:$0xff]  ;;  %v237_v10 = vsel %vm226_vm1, %v212_v4, 0  ;;  %v214_v15 = vld [vmem:[%s1734_s27 + $0x20] sm:$0xff]  ;;  %v215_v16 = vld [vmem:[%s1734_s27 + $0x28] sm:$0xff] }
  0x1c   : > { %v279_v8 = vand.u32 4294901760, %v231_v5  ;;  %v282_v9 = vand.u32 4294901760, %v234_v6  ;;  %v240_v11 = vsel %vm226_vm1, %v213_v7, 0  ;;  %v285_v13 = vand.u32 4294901760, %v237_v10  ;;  %v216_v22 = vld [vmem:[%s1734_s27 + $0x30] sm:$0xff]  ;;  %v217_v23 = vld [vmem:[%s1734_s27 + $0x38] sm:$0xff]  ;;  %p1568_p13 = pnand %p1567_p12, %p1705_p4 }
  0x1d   : > { %v288_v14 = vand.u32 4294901760, %v240_v11  ;;  %v243_v18 = vsel %vm226_vm1, %v214_v15, 0  ;;  %v246_v19 = vsel %vm226_vm1, %v215_v16, 0  ;;  %v249_v25 = vsel %vm226_vm1, %v216_v22, 0  ;;  %v218_v29 = vld [vmem:[%s1734_s27 + $0x40] sm:$0xff]  ;;  %v219_v30 = vld [vmem:[%s1734_s27 + $0x48] sm:$0xff] }
  0x1e   : > { %v1744_v12 = vpack.c.bf16 %v282_v9, %v279_v8  ;;  %v291_v20 = vand.u32 4294901760, %v243_v18  ;;  %v294_v21 = vand.u32 4294901760, %v246_v19  ;;  %v252_v26 = vsel %vm226_vm1, %v217_v23, 0  ;;  %v220_v40 = vld [vmem:[%s1734_s27 + $0x50] sm:$0xff]  ;;  %v221_v41 = vld [vmem:[%s1734_s27 + $0x58] sm:$0xff]  ;;  %v222_v60 = vld [vmem:[%s1734_s27 + $0x60] sm:$0xff]  ;;  %p1569_p0 = pneg %p1568_p13 }
  0x1f   : > { %v1752_v17 = vpack.c.bf16 %v288_v14, %v285_v13  ;;  %v297_v27 = vand.u32 4294901760, %v249_v25  ;;  %v300_v28 = vand.u32 4294901760, %v252_v26  ;;  %v255_v32 = vsel %vm226_vm1, %v218_v29, 0  ;;  %v223_v61 = vld [vmem:[%s1734_s27 + $0x68] sm:$0xff]  ;;  %s1570_s24 = sshll.u32 %s1649_s23, 4  ;;  %s1571_s24 = int_to_ptr.vmem [resolvable:$false] %s1570_s24 }
  0x20   : > { %1357 = vmatpush3.bf16.xpose.msra.mxu1 %v1744_v12  ;;  %1429 = vmatpush3.bf16.xpose.msra.mxu0 %v1744_v12  ;;  %v1762_v24 = vpack.c.bf16 %v294_v21, %v291_v20  ;;  %v258_v33 = vsel %vm226_vm1, %v219_v30, 0  ;;  %v1776_v34 = vsub.f32 %v231_v5, %v279_v8  ;;  %v1778_v35 = vsub.f32 %v234_v6, %v282_v9  ;;  %v209_v6 = vld [vmem:[%s198_s3] sm:$0xff]  ;;  %v224_v9 = vld [vmem:[%s1734_s27 + $0x70] sm:$0xff]  ;;  %s1572_s25 = scalar_lea.vmem %s1571_s24, 256  ;;  %p1573_p1 = scmp.lt.s32.totalorder %s1989_s8, %s1571_s24 }
  0x21   : > { %1358 = vmatprep.subr.bf16.mxu1 %v1646_v0  ;;  %1430 = vmatprep.subr.bf16.mxu0 %v1646_v0  ;;  %v1772_v31 = vpack.c.bf16 %v300_v28, %v297_v27  ;;  %v1780_v36 = vsub.f32 %v237_v10, %v285_v13  ;;  %v1782_v37 = vsub.f32 %v240_v11, %v288_v14  ;;  %v303_v38 = vand.u32 4294901760, %v255_v32  ;;  %v225_v10 = vld [vmem:[%s1734_s27 + $0x78] sm:$0xff]  ;;  %p1574_p2 = scmp.lt.s32.totalorder %s1572_s25, %s1566_s12 }
  0x22   : > { %v306_v39 = vand.u32 4294901760, %v258_v33  ;;  %v1404_v42 = vpack.c.bf16 %v1778_v35, %v1776_v34  ;;  %v1788_v43 = vsub.f32 %v243_v18, %v291_v20  ;;  %v1790_v44 = vsub.f32 %v246_v19, %v294_v21 }
  0x23   : > { %v1793_v45 = vsub.f32 %v249_v25, %v297_v27  ;;  %v1796_v46 = vsub.f32 %v252_v26, %v300_v28  ;;  %v1800_v47 = vsub.f32 %v255_v32, %v303_v38  ;;  %v261_v49 = vsel %vm226_vm1, %v220_v40, 0  ;;  %p1575_p3 = por %p1574_p2, %p1573_p1 }
  0x24   : > { %v1802_v48 = vsub.f32 %v258_v33, %v306_v39  ;;  %v264_v50 = vsel %vm226_vm1, %v221_v41, 0  ;;  %v1407_v51 = vpack.c.bf16 %v1782_v37, %v1780_v36  ;;  %v1410_v52 = vpack.c.bf16 %v1790_v44, %v1788_v43 }
  0x25   : > { %v1413_v53 = vpack.c.bf16 %v1796_v46, %v1793_v45  ;;  %v1814_v55 = vpack.c.bf16 %v306_v39, %v303_v38  ;;  %v309_v56 = vand.u32 4294901760, %v261_v49  ;;  %v312_v57 = vand.u32 4294901760, %v264_v50  ;;  %p1576_p5 = pnand %p1575_p3, %p1569_p0 }
  0x26   : > { %v1416_v54 = vpack.c.bf16 %v1802_v48, %v1800_v47  ;;  %v267_v63 = vsel %vm226_vm1, %v222_v60, 0  ;;  %v270_v2 = vsel %vm226_vm1, %v223_v61, 0  ;;  %v228_v11 = vsel %vm226_vm1, %v209_v6, 0 }
  0x27   : > { %v1816_v58 = vsub.f32 %v261_v49, %v309_v56  ;;  %v1818_v59 = vsub.f32 %v264_v50, %v312_v57  ;;  %v1834_v3 = vpack.c.bf16 %v312_v57, %v309_v56  ;;  %v315_v4 = vand.u32 4294901760, %v267_v63 }
  0x28   : > { %1360 = vmatpush3.bf16.xpose.msra.mxu1 %v1752_v17  ;;  %1432 = vmatpush3.bf16.xpose.msra.mxu0 %v1752_v17  ;;  %v318_v5 = vand.u32 4294901760, %v270_v2  ;;  %v273_v14 = vsel %vm226_vm1, %v224_v9, 0  ;;  %v276_v15 = vsel %vm226_vm1, %v225_v10, 0  ;;  %v1851_v16 = vand.u32 4294901760, %v228_v11 }
  0x29   : > { %1361 = vmatprep.subr.bf16.mxu1 %v1646_v0  ;;  %1433 = vmatprep.subr.bf16.mxu0 %v1646_v0  ;;  %v1419_v62 = vpack.c.bf16 %v1818_v59, %v1816_v58  ;;  %v1836_v7 = vsub.f32 %v267_v63, %v315_v4  ;;  %v321_v19 = vand.u32 4294901760, %v273_v14  ;;  %v324_v20 = vand.u32 4294901760, %v276_v15 }
  0x2a   : > { %v1838_v8 = vsub.f32 %v270_v2, %v318_v5  ;;  %v1853_v18 = vpack.c.bf16 %v318_v5, %v315_v4  ;;  %v1860_v23 = vsub.f32 %v228_v11, %v1851_v16  ;;  %v372_v25 = vand.u32 4294901760, %v1776_v34 }
  0x2b   : > { %v1855_v21 = vsub.f32 %v273_v14, %v321_v19  ;;  %v1857_v22 = vsub.f32 %v276_v15, %v324_v20  ;;  %v379_v26 = vand.u32 4294901760, %v1778_v35  ;;  %v1871_v29 = vpack.c.bf16 %v324_v20, %v321_v19 }
  0x2c   : > { %v1422_v13 = vpack.c.bf16 %v1838_v8, %v1836_v7  ;;  %v361_v28 = vand.u32 4294901760, %v1860_v23  ;;  %v373_v30 = vsub.f32 %v1776_v34, %v372_v25  ;;  %v386_v40 = vand.u32 4294901760, %v1780_v36 }
  0x2d   : > { %v1425_v27 = vpack.c.bf16 %v1857_v22, %v1855_v21  ;;  %v380_v32 = vsub.f32 %v1778_v35, %v379_v26  ;;  %v393_v41 = vand.u32 4294901760, %v1782_v37  ;;  %v1452_v56 = vpack.c.bf16 %v379_v26, %v372_v25 }
  0x2e   : > { %v362_v33 = vsub.f32 %v1860_v23, %v361_v28  ;;  %v374_v38 = vand.u32 4294901760, %v373_v30  ;;  %v387_v57 = vsub.f32 %v1780_v36, %v386_v40  ;;  %v400_v2 = vand.u32 4294901760, %v1788_v43 }
  0x2f   : > { %v381_v39 = vand.u32 4294901760, %v380_v32  ;;  %v394_v60 = vsub.f32 %v1782_v37, %v393_v41  ;;  %v407_v4 = vand.u32 4294901760, %v1790_v44  ;;  %v1455_v6 = vpack.c.bf16 %v393_v41, %v386_v40 }
  0x30   : > { %1363 = vmatpush3.bf16.xpose.msra.mxu1 %v1762_v24  ;;  %1435 = vmatpush3.bf16.xpose.msra.mxu0 %v1762_v24  ;;  %v363_v49 = vand.u32 4294901760, %v362_v33  ;;  %v388_v61 = vand.u32 4294901760, %v387_v57  ;;  %v401_v9 = vsub.f32 %v1788_v43, %v400_v2  ;;  %v414_v15 = vand.u32 4294901760, %v1793_v45 }
  0x31   : > { %1364 = vmatprep.subr.bf16.mxu1 %v1646_v0  ;;  %1436 = vmatprep.subr.bf16.mxu0 %v1646_v0  ;;  %v1380_v50 = vpack.c.bf16 %v381_v39, %v374_v38  ;;  %v395_v63 = vand.u32 4294901760, %v394_v60  ;;  %v408_v10 = vsub.f32 %v1790_v44, %v407_v4  ;;  %v421_v19 = vand.u32 4294901760, %v1796_v46 }
  0x32   : > { %v402_v11 = vand.u32 4294901760, %v401_v9  ;;  %v1458_v25 = vpack.c.bf16 %v407_v4, %v400_v2  ;;  %v415_v26 = vsub.f32 %v1793_v45, %v414_v15  ;;  %v428_v33 = vand.u32 4294901760, %v1800_v47 }
  0x33   : > { %v1383_v5 = vpack.c.bf16 %v395_v63, %v388_v61  ;;  %v409_v14 = vand.u32 4294901760, %v408_v10  ;;  %v435_v38 = vand.u32 4294901760, %v1802_v48  ;;  %v1461_v40 = vpack.c.bf16 %v421_v19, %v414_v15 }
  0x34   : > { %v416_v30 = vand.u32 4294901760, %v415_v26  ;;  %v429_v41 = vsub.f32 %v1800_v47, %v428_v33  ;;  %v442_v57 = vand.u32 4294901760, %v1816_v58  ;;  %v449_v60 = vand.u32 4294901760, %v1818_v59 }
  0x35   : > { %v1386_v20 = vpack.c.bf16 %v409_v14, %v402_v11  ;;  %v1464_v63 = vpack.c.bf16 %v435_v38, %v428_v33  ;;  %v456_v9 = vand.u32 4294901760, %v1836_v7  ;;  %v463_v10 = vand.u32 4294901760, %v1838_v8 }
  0x36   : > { %v443_v2 = vsub.f32 %v1816_v58, %v442_v57  ;;  %v450_v4 = vsub.f32 %v1818_v59, %v449_v60  ;;  %v1467_v14 = vpack.c.bf16 %v449_v60, %v442_v57  ;;  %v470_v26 = vand.u32 4294901760, %v1855_v21 }
  0x37   : > { %v457_v15 = vsub.f32 %v1836_v7, %v456_v9 }
  0x38   : > { %1366 = vmatpush3.bf16.xpose.msra.mxu1 %v1772_v31  ;;  %1438 = vmatpush3.bf16.xpose.msra.mxu0 %v1772_v31  ;;  %v471_v33 = vsub.f32 %v1855_v21, %v470_v26 }
  0x39   : > { %1367 = vmatprep.subr.bf16.mxu1 %v1646_v0  ;;  %1439 = vmatprep.subr.bf16.mxu0 %v1646_v0 }
  0x40   : > { %1369 = vmatpush3.bf16.xpose.msra.mxu1 %v1814_v55  ;;  %1441 = vmatpush3.bf16.xpose.msra.mxu0 %v1814_v55 }
  0x41   : > { %1370 = vmatprep.subr.bf16.mxu1 %v1646_v0  ;;  %1442 = vmatprep.subr.bf16.mxu0 %v1646_v0 }
  0x48   : > { %1372 = vmatpush3.bf16.xpose.msra.mxu1 %v1834_v3  ;;  %1444 = vmatpush3.bf16.xpose.msra.mxu0 %v1834_v3 }
  0x49   : > { %1373 = vmatprep.subr.bf16.mxu1 %v1646_v0  ;;  %1445 = vmatprep.subr.bf16.mxu0 %v1646_v0 }
  0x50   : > { %1375 = vmatpush3.bf16.xpose.msra.mxu1 %v1853_v18  ;;  %1447 = vmatpush3.bf16.xpose.msra.mxu0 %v1853_v18 }
  0x51   : > { %1376 = vmatprep.subr.bf16.mxu1 %v1646_v0  ;;  %1448 = vmatprep.subr.bf16.mxu0 %v1646_v0 }
  0x58   : > { %1378 = vmatpush3.bf16.xpose.msra.mxu1 %v1871_v29  ;;  %1450 = vmatpush3.bf16.xpose.msra.mxu0 %v1871_v29 }
  0x59   : > { %1379 = vmatprep.subr.bf16.mxu1 %v1646_v0  ;;  %1451 = vmatprep.subr.bf16.mxu0 %v1646_v0 }
  0x5f   : > { %1178 = vmatmul.mubr.f32.vlgmr.msra.gmra.mrb[0].mxu1 %v363_v49  ;;  %1283 = vmatmul.mubr.f32.vlgmr.msra.gmra.mrb[0].mxu0 %v361_v28  ;;  %v422_v28 = vsub.f32 %v1796_v46, %v421_v19  ;;  %v436_v49 = vsub.f32 %v1802_v48, %v435_v38  ;;  %v464_v19 = vsub.f32 %v1838_v8, %v463_v10 }
  0x60   : > { %1381 = vmatpush3.bf16.xpose.msra.mxu1 %v1380_v50  ;;  %1453 = vmatpush3.bf16.xpose.msra.mxu0 %v1452_v56  ;;  %v430_v50 = vand.u32 4294901760, %v429_v41 }
  0x61   : > { %1382 = vmatprep.subr.bf16.mxu1 %v1646_v0  ;;  %1454 = vmatprep.subr.bf16.mxu0 %v1646_v0  ;;  %v423_v32 = vand.u32 4294901760, %v422_v28  ;;  %v437_v56 = vand.u32 4294901760, %v436_v49  ;;  %v477_v28 = vand.u32 4294901760, %v1857_v22 }
  0x62   : > { %1212 = vmatprep.mubr.msk.f32.mxu1 %vm1647_vm0, %v1648_v1  ;;  %1317 = vmatprep.mubr.msk.f32.mxu0 %vm1647_vm0, %v1648_v1 }
  0x63   : > { %v1389_v39 = vpack.c.bf16 %v423_v32, %v416_v30  ;;  %v1392_v61 = vpack.c.bf16 %v437_v56, %v430_v50  ;;  %v1470_v32 = vpack.c.bf16 %v463_v10, %v456_v9  ;;  %v478_v38 = vsub.f32 %v1857_v22, %v477_v28 }
  0x64   : > { %v1473_v49 = vpack.c.bf16 %v477_v28, %v470_v26 }
  0x68   : > { %1384 = vmatpush3.bf16.xpose.msra.mxu1 %v1383_v5  ;;  %1456 = vmatpush3.bf16.xpose.msra.mxu0 %v1455_v6  ;;  %v444_v5 = vand.u32 4294901760, %v443_v2  ;;  %v451_v6 = vand.u32 4294901760, %v450_v4 }
  0x69   : > { %1385 = vmatprep.subr.bf16.mxu1 %v1646_v0  ;;  %1457 = vmatprep.subr.bf16.mxu0 %v1646_v0 }
  0x6a   : > { %v1395_v11 = vpack.c.bf16 %v451_v6, %v444_v5 }
  0x70   : > { %1387 = vmatpush3.bf16.xpose.msra.mxu1 %v1386_v20  ;;  %1459 = vmatpush3.bf16.xpose.msra.mxu0 %v1458_v25  ;;  %v458_v20 = vand.u32 4294901760, %v457_v15  ;;  %v465_v25 = vand.u32 4294901760, %v464_v19 }
  0x71   : > { %1388 = vmatprep.subr.bf16.mxu1 %v1646_v0  ;;  %1460 = vmatprep.subr.bf16.mxu0 %v1646_v0 }
  0x72   : > { %v1398_v30 = vpack.c.bf16 %v465_v25, %v458_v20 }
  0x78   : > { %1390 = vmatpush3.bf16.xpose.msra.mxu1 %v1389_v39  ;;  %1462 = vmatpush3.bf16.xpose.msra.mxu0 %v1461_v40  ;;  %v472_v39 = vand.u32 4294901760, %v471_v33  ;;  %v479_v40 = vand.u32 4294901760, %v478_v38 }
  0x79   : > { %1391 = vmatprep.subr.bf16.mxu1 %v1646_v0  ;;  %1463 = vmatprep.subr.bf16.mxu0 %v1646_v0 }
  0x7a   : > { %v1401_v41 = vpack.c.bf16 %v479_v40, %v472_v39 }
  0x80   : > { %1393 = vmatpush3.bf16.xpose.msra.mxu1 %v1392_v61  ;;  %1465 = vmatpush3.bf16.xpose.msra.mxu0 %v1464_v63 }
  0x81   : > { %1394 = vmatprep.subr.bf16.mxu1 %v1646_v0  ;;  %1466 = vmatprep.subr.bf16.mxu0 %v1646_v0 }
  0x88   : > { %1396 = vmatpush3.bf16.xpose.msra.mxu1 %v1395_v11  ;;  %1468 = vmatpush3.bf16.xpose.msra.mxu0 %v1467_v14 }
  0x89   : > { %1397 = vmatprep.subr.bf16.mxu1 %v1646_v0  ;;  %1469 = vmatprep.subr.bf16.mxu0 %v1646_v0 }
  0x90   : > { %1399 = vmatpush3.bf16.xpose.msra.mxu1 %v1398_v30  ;;  %1471 = vmatpush3.bf16.xpose.msra.mxu0 %v1470_v32 }
  0x91   : > { %1400 = vmatprep.subr.bf16.mxu1 %v1646_v0  ;;  %1472 = vmatprep.subr.bf16.mxu0 %v1646_v0 }
  0x98   : > { %1402 = vmatpush3.bf16.xpose.msra.mxu1 %v1401_v41  ;;  %1474 = vmatpush3.bf16.xpose.msra.mxu0 %v1473_v49 }
  0x99   : > { %1403 = vmatprep.subr.bf16.mxu1 %v1646_v0  ;;  %1475 = vmatprep.subr.bf16.mxu0 %v1646_v0 }
  0x9f   : > { %1213 = vmatmul.mubr.f32.vlgmr.msra.gmra.mrb[0].mxu1 %v1851_v16  ;;  %1318 = vmatmul.mubr.f32.vlgmr.msra.gmra.mrb[0].mxu0 %v1851_v16 }
  0xa0   : > { %1405 = vmatpush3.bf16.xpose.msra.mxu1 %v1404_v42  ;;  %1477 = vmatpush3.bf16.xpose.msra.mxu0 %v1744_v12 }
  0xa1   : > { %1406 = vmatprep.subr.bf16.mxu1 %v1646_v0  ;;  %1478 = vmatprep.subr.bf16.mxu0 %v1646_v0 }
  0xa2   : > { %1247 = vmatprep.mubr.msk.f32.mxu1 %vm1647_vm0, %v1648_v1  ;;  %1352 = vmatprep.mubr.msk.f32.mxu0 %vm1647_vm0, %v1648_v1 }
  0xa8   : > { %1408 = vmatpush3.bf16.xpose.msra.mxu1 %v1407_v51  ;;  %1480 = vmatpush3.bf16.xpose.msra.mxu0 %v1752_v17 }
  0xa9   : > { %1409 = vmatprep.subr.bf16.mxu1 %v1646_v0  ;;  %1481 = vmatprep.subr.bf16.mxu0 %v1646_v0 }
  0xb0   : > { %1411 = vmatpush3.bf16.xpose.msra.mxu1 %v1410_v52  ;;  %1483 = vmatpush3.bf16.xpose.msra.mxu0 %v1762_v24 }
  0xb1   : > { %1412 = vmatprep.subr.bf16.mxu1 %v1646_v0  ;;  %1484 = vmatprep.subr.bf16.mxu0 %v1646_v0 }
  0xb8   : > { %1414 = vmatpush3.bf16.xpose.msra.mxu1 %v1413_v53  ;;  %1486 = vmatpush3.bf16.xpose.msra.mxu0 %v1772_v31 }
  0xb9   : > { %1415 = vmatprep.subr.bf16.mxu1 %v1646_v0  ;;  %1487 = vmatprep.subr.bf16.mxu0 %v1646_v0 }
  0xc0   : > { %1417 = vmatpush3.bf16.xpose.msra.mxu1 %v1416_v54  ;;  %1489 = vmatpush3.bf16.xpose.msra.mxu0 %v1814_v55 }
  0xc1   : > { %1418 = vmatprep.subr.bf16.mxu1 %v1646_v0  ;;  %1490 = vmatprep.subr.bf16.mxu0 %v1646_v0 }
  0xc8   : > { %1420 = vmatpush3.bf16.xpose.msra.mxu1 %v1419_v62  ;;  %1492 = vmatpush3.bf16.xpose.msra.mxu0 %v1834_v3 }
  0xc9   : > { %1421 = vmatprep.subr.bf16.mxu1 %v1646_v0  ;;  %1493 = vmatprep.subr.bf16.mxu0 %v1646_v0 }
  0xd0   : > { %1423 = vmatpush3.bf16.xpose.msra.mxu1 %v1422_v13  ;;  %1495 = vmatpush3.bf16.xpose.msra.mxu0 %v1853_v18 }
  0xd1   : > { %1424 = vmatprep.subr.bf16.mxu1 %v1646_v0  ;;  %1496 = vmatprep.subr.bf16.mxu0 %v1646_v0 }
  0xd8   : > { %1426 = vmatpush3.bf16.xpose.msra.mxu1 %v1425_v27  ;;  %1498 = vmatpush3.bf16.xpose.msra.mxu0 %v1871_v29 }
  0xdf   : > { %1248 = vmatmul.mubr.f32.vlgmr.msra.gmra.mrb[0].mxu1 %v1860_v23  ;;  %1353 = vmatmul.mubr.f32.vlgmr.msra.gmra.mrb[0].mxu0 %v1851_v16 }
 0x1b2   : > { %v620_v1 = vpop.f32.mrb[0].mxu1  ;;  %v915_v12 = vpop.f32.mrb[0].mxu0 }
 0x1b3   : > { %v1499_v17 = vadd.f32 %v915_v12, %v620_v1  ;;  %v1249_v0 = vpop.f32.mrb[1].mxu1  ;;  %v1354_v24 = vpop.f32.mrb[1].mxu0 }
 0x1b5   : > { %919 = vst [vmem:[%s191_s7] sm:$0xff] %v1499_v17 }
 0x1b6   : > { %1579 = shalt.err (!%p1576_p5)
}
 0x1b7   : > { %s1580_s26 = scalar_lea.hbm %s1987_s18, 128  ;;  %s1584_s29 = scalar_lea.hbm %s2036_s2, 256 }
 0x1b8   : > { %p1581_p6 = scmp.ne.s32.totalorder %s1987_s18, %s1580_s26  ;;  %p1585_p10 = scmp.lt.u32.totalorder %s1987_s18, %s2036_s2 }
 0x1b9   : > { %p1586_p11 = scmp.lt.u32.totalorder %s1584_s29, %s1580_s26  ;;  %p1588_p13 = scmp.lt.u32.totalorder %s1580_s26, %s1987_s18 }
 0x1ba   : > { %p1582_p7 = pnand %p1581_p6, %p1705_p4 }
 0x1bb   : > { %p1587_p12 = por %p1586_p11, %p1585_p10 }
 0x1bc   : > { %p1583_p9 = pneg %p1582_p7 }
 0x1bd   : > { %p1589_p0 = por %p1588_p13, %p1587_p12 }
 0x1bf   : > { %p1590_p1 = pnand %p1589_p0, %p1583_p9 }
 0x1c1   : > { %1593 = shalt.err (!%p1590_p1)
}
 0x1c2   : > { %1508 = dma.vmem_to_hbm [thread:$0]  (%p1705_p4), %s1989_s8, 128, %s1987_s18, %s921_s20  }
 0x1c3 PF: > { %p1514_p2 = scmp.ge.s32.totalorder %s1644_s14, 2  ;;  %s948_s4 = sand.u32 1, %s1624_s9  }
 0x1c4   : > { %s949_s5 = scalar_lea.sflag [#allocation3], %s948_s4 }
 0x1c5   : > { %p1511_p3 = pnand %p1514_p2, %p1712_p8 }
 0x1c7   : > { %1619 = dma.done.wait (!%p1511_p3), %s949_s5, 128  }
 0x1c8   : > { %1621 = vsyncadd (!%p1511_p3), %s949_s5, 4294967168  ;;  %s15_s14 = sadd.s32 1, %s1644_s14   ;;  %s2039_s9 = smov %s1628_s10 }
 0x1c9   : > { %p12_p5 = scmp.ge.s32.totalorder %s15_s14, 4   ;;  %s2040_s10 = smov %s1632_s11 }
 0x1ca   : > { %s2041_s11 = smov %s1718_s22  ;;  %s2042_s12 = smov %s1640_s13 }
 0x1cb   : > { %s2043_s13 = smov %s2045_s17  ;;  %14 = sbr.rel (!%p12_p5) target bundleno = 4 (0x4), region = 66 }
 0x1d2   :  { %954 = vsyncpa [#allocation3], 1 }
 0x1d3   :  { %956 = vsyncpa [#allocation3 + $0x1], 1 }

</bundles_post_ra>
